<compile_context>
chip_gen: v7x
topology: tpu7x:2x2x1
jax: 0.10.0
libtpu: 0.0.40
codegen_flags: <defaults>
</compile_context>

<pallas_src>
import jax
import jax.numpy as jnp
from jax import lax
from jax.experimental import pallas as pl
from jax.experimental.pallas import tpu as pltpu


_LANE = 128
_SUBLANE_F32 = 8
_SUBLANE_BF16 = 16
_MAX_TM = 1024
_MIN_ROWS_FOR_TC_SPLIT = 512          # only split the grid for v7x dual-TC when M is big


def _round_up(x, m):
    return ((x + m - 1) // m) * m


def _vmem_budgets():
    """Generation-aware VMEM budgets (v5e/v6e: 128 MiB, v7x: 64 MiB)."""
    try:
        cap = int(pltpu.get_tpu_info().vmem_capacity_bytes)
    except Exception:
        cap = 64 * 1024 * 1024                      # v7x-safe fallback
    tile_budget = cap // 2                          # bytes devoted to pipelined tiles + weight
    vmem_limit = min((cap * 3) // 4, cap - (8 << 20))
    return tile_budget, vmem_limit


def _text_proj_kernel(x_ref, w_ref, b_ref, o_ref):
    # x: [tm, K], w: [K, N_pad] (pre-transposed once), b: [1, N_pad] f32,
    # o: [tm, N_pad].  NN contraction on the MXU with f32 accumulation; the
    # bias add / cast epilogue stays in f32 (v5e has no bf16 VALU).
    acc = lax.dot_general(
        x_ref[...],
        w_ref[...],
        dimension_numbers=(((1,), (0,)), ((), ())),
        preferred_element_type=jnp.float32,
    )
    o_ref[...] = (acc + b_ref[...]).astype(o_ref.dtype)


def prepare_text_proj_params(weight, bias, *, compute_dtype=jnp.bfloat16):
    """One-time nn.Linear parameter prep (do NOT call per forward pass).

    weight: [projection_dim, dim_latent] (PyTorch layout), bias: [projection_dim]
    Returns (w_kn [K, N_pad], b_1n [1, N_pad] f32, n_out).
    """
    N, _K = weight.shape
    n_lane = _round_up(N, _LANE)
    # Lane-dense (unmasked vst) output only when the zero-pad inflates weight
    # DMA bytes by <=25%; otherwise keep N unpadded and accept masked stores.
    N_pad = n_lane if (N % _LANE == 0 or n_lane * 4 <= N * 5) else N

    w = weight.astype(compute_dtype)
    b = bias.astype(jnp.float32)
    if N_pad != N:
        w = jnp.pad(w, ((0, N_pad - N), (0, 0)))
        b = jnp.pad(b, ((0, N_pad - N),))
    w_kn = jnp.asarray(w.T)                         # [K, N_pad]: NN matmul in-kernel
    return w_kn, b.reshape(1, N_pad), N


def text_proj_pallas(x, w_kn, b_1n, n_out, *, out_dtype=None):
    """y = x @ weight.T + bias using pre-prepared (transposed/padded) params.

    x:     [B, num_words, dim_latent]
    w_kn:  [dim_latent, N_pad]   (from prepare_text_proj_params)
    b_1n:  [1, N_pad] f32
    n_out: original projection_dim
    """
    B, W, K = x.shape
    Kw, N_pad = w_kn.shape
    assert Kw == K, f"dim_latent mismatch: x has {K}, weight has {Kw}"
    M = B * W
    out_dtype = out_dtype or x.dtype
    compute_dtype = w_kn.dtype

    sublane = _SUBLANE_BF16 if compute_dtype == jnp.bfloat16 else _SUBLANE_F32
    x_bytes = jnp.dtype(compute_dtype).itemsize
    o_bytes = jnp.dtype(out_dtype).itemsize

    tile_budget, vmem_limit = _vmem_budgets()
    # Weight + bias are single-buffered (Buffered(1), constant block) -> counted once.
    fixed = N_pad * K * x_bytes + N_pad * 4
    # x and out row tiles are double-buffered by the pipeline.
    per_row = 2 * (K * x_bytes + N_pad * o_bytes)
    avail = tile_budget - fixed

    if avail < per_row * sublane:
        # TODO(synk): add K/N tiling for projections whose weight alone exceeds
        # the VMEM budget; fall back to XLA for that (rare) configuration.
        y = jnp.dot(x.reshape(M, K).astype(jnp.float32),
                    w_kn.astype(jnp.float32)) + b_1n
        return y[:, :n_out].astype(out_dtype).reshape(B, W, n_out)

    tm = max(sublane, min(avail // per_row, _MAX_TM))
    tm = (tm // sublane) * sublane
    M_rows = _round_up(M, sublane)
    if tm >= M_rows and M_rows >= _MIN_ROWS_FOR_TC_SPLIT:
        # v7x shards "parallel" grid axes across 2 TensorCores: keep >=2 steps.
        tm = _round_up((M_rows + 1) // 2, sublane)
    tm = min(tm, M_rows)
    M_pad = _round_up(M_rows, tm)

    x2d = x.reshape(M, K).astype(compute_dtype)
    if M_pad != M:
        x2d = jnp.pad(x2d, ((0, M_pad - M), (0, 0)))

    out2d = pl.pallas_call(
        _text_proj_kernel,
        out_shape=jax.ShapeDtypeStruct((M_pad, N_pad), out_dtype),
        grid_spec=pltpu.PrefetchScalarGridSpec(
            num_scalar_prefetch=0,
            grid=(M_pad // tm,),
            in_specs=[
                pl.BlockSpec((tm, K), lambda i: (i, 0)),              # x row tile (double-buffered)
                pl.BlockSpec((K, N_pad), lambda i: (0, 0),
                             pipeline_mode=pl.Buffered(1)),            # resident weight, fetched once
                pl.BlockSpec((1, N_pad), lambda i: (0, 0),
                             pipeline_mode=pl.Buffered(1)),            # resident bias row
            ],
            out_specs=pl.BlockSpec((tm, N_pad), lambda i: (i, 0)),
        ),
        compiler_params=pltpu.CompilerParams(
            dimension_semantics=("parallel",),
            vmem_limit_bytes=int(vmem_limit),
        ),
    )(x2d, w_kn, b_1n)

    return out2d[:M, :n_out].reshape(B, W, n_out)


def word_embed_forward(word_embed, text_proj_params, **kwargs):
    """Mirrors WordEmbed.forward (training branch) from the point where the
    stacked CLIP word embeddings exist: applies text_proj and returns dict.
    `text_proj_params=None` corresponds to projection_dim < 0 (nn.Identity)."""
    if text_proj_params is None:
        return {"word_embed": word_embed}
    return {"word_embed": text_proj_pallas(word_embed, *text_proj_params, **kwargs)}


if __name__ == "__main__":
    # Small shapes consistent with the module: batch=2 captions, num_words=8,
    # dim_latent=64 (stand-in for the CLIP latent), projection_dim=32.
    batch, num_words, dim_latent, projection_dim = 2, 8, 64, 32

    key = jax.random.PRNGKey(0)
    k_x, k_w, k_b = jax.random.split(key, 3)

    # Simulated output of the CLIP text encoder, stacked per caption.
    word_embed = jax.random.normal(k_x, (batch, num_words, dim_latent), dtype=jnp.float32)
    # Deterministic nn.Linear parameters (weight: [out, in], bias: [out]).
    weight = jax.random.normal(k_w, (projection_dim, dim_latent), dtype=jnp.float32) * 0.02
    bias = jax.random.normal(k_b, (projection_dim,), dtype=jnp.float32) * 0.01

    ref = word_embed @ weight.T + bias

    # f32 weight path (strict check; exercises the unpadded-N / masked-store branch).
    params_f32 = prepare_text_proj_params(weight, bias, compute_dtype=jnp.float32)
    out = word_embed_forward(word_embed, params_f32)
    result = jax.block_until_ready(out["word_embed"])
    assert result.shape == (batch, num_words, projection_dim)
    assert jnp.allclose(result, ref, atol=1e-4, rtol=1e-4), "f32 path mismatch"

    # Default bf16 weight/x path (halves weight DMA bytes; f32 MXU accumulation).
    params_bf16 = prepare_text_proj_params(weight, bias)
    out_bf16 = jax.block_until_ready(text_proj_pallas(word_embed, *params_bf16))
    assert out_bf16.shape == (batch, num_words, projection_dim)
    assert jnp.allclose(out_bf16, ref, atol=3e-2, rtol=3e-2), "bf16 path mismatch"

    # Lane-dense branch: projection_dim already a multiple of 128.
    weight128 = jax.random.normal(k_w, (128, dim_latent), dtype=jnp.float32) * 0.02
    bias128 = jax.random.normal(k_b, (128,), dtype=jnp.float32) * 0.01
    params128 = prepare_text_proj_params(weight128, bias128, compute_dtype=jnp.float32)
    out128 = jax.block_until_ready(text_proj_pallas(word_embed, *params128))
    ref128 = word_embed @ weight128.T + bias128
    assert out128.shape == (batch, num_words, 128)
    assert jnp.allclose(out128, ref128, atol=1e-4, rtol=1e-4), "lane-dense path mismatch"

    print("KERNEL_OK")
</pallas_src>

<mosaic_0001>
module attributes {stable_mosaic.version = 11 : i64} {
  func.func @_text_proj_kernel(%arg0: i32, %arg1: memref<16x64xf32, #tpu.memory_space<vmem>>, %arg2: memref<64x32xf32, #tpu.memory_space<vmem>>, %arg3: memref<1x32xf32, #tpu.memory_space<vmem>>, %arg4: memref<16x32xf32, #tpu.memory_space<vmem>>) attributes {dimension_semantics = [#tpu.dimension_semantics<parallel>], iteration_bounds = array<i64: 1>, scalar_prefetch = 0 : i64, scratch_operands = 0 : i64, tpu.core_type = #tpu.core_type<tc>, window_params = [{transform_indices = @transform_0, window_bounds = array<i64: 16, 64>}, {pipeline_mode = #tpu.pipeline_mode<synchronous>, transform_indices = @transform_1, window_bounds = array<i64: 64, 32>}, {pipeline_mode = #tpu.pipeline_mode<synchronous>, transform_indices = @transform_2, window_bounds = array<i64: 1, 32>}, {transform_indices = @transform_3, window_bounds = array<i64: 16, 32>}]} {
    %c0 = arith.constant 0 : index
    %c0_0 = arith.constant 0 : index
    %0 = vector.load %arg1[%c0, %c0_0] : memref<16x64xf32, #tpu.memory_space<vmem>>, vector<16x64xf32>
    %c0_1 = arith.constant 0 : index
    %c0_2 = arith.constant 0 : index
    %1 = vector.load %arg2[%c0_1, %c0_2] : memref<64x32xf32, #tpu.memory_space<vmem>>, vector<64x32xf32>
    %cst = arith.constant dense<0.000000e+00> : vector<16x32xf32>
    %2 = tpu.matmul %0, %1, %cst {dimension_numbers = #tpu.dot_dimension_numbers<[1], [0], [0], [1], [0, 0, 1, 1], [], []>} : vector<16x64xf32>, vector<64x32xf32>, vector<16x32xf32> -> vector<16x32xf32>
    %c0_3 = arith.constant 0 : index
    %c0_4 = arith.constant 0 : index
    %3 = vector.load %arg3[%c0_3, %c0_4] : memref<1x32xf32, #tpu.memory_space<vmem>>, vector<1x32xf32>
    %4 = vector.broadcast %3 : vector<1x32xf32> to vector<16x32xf32>
    %5 = arith.addf %2, %4 : vector<16x32xf32>
    %c0_5 = arith.constant 0 : index
    %c0_6 = arith.constant 0 : index
    %6 = vector.load %arg4[%c0_5, %c0_6] : memref<16x32xf32, #tpu.memory_space<vmem>>, vector<16x32xf32>
    tpu.vector_store %arg4[%c0_5, %c0_6], %5 {strides = array<i32>} : memref<16x32xf32, #tpu.memory_space<vmem>>, vector<16x32xf32>,
    return
  }
  func.func @transform_0(%arg0: i32) -> (i32, i32) {
    %c0_i32 = arith.constant 0 : i32
    %c0_i32_0 = arith.constant 0 : i32
    return %arg0, %c0_i32 : i32, i32
  }
  func.func @transform_1(%arg0: i32) -> (i32, i32) {
    %c0_i32 = arith.constant 0 : i32
    %c0_i32_0 = arith.constant 0 : i32
    %c0_i32_1 = arith.constant 0 : i32
    return %c0_i32, %c0_i32_0 : i32, i32
  }
  func.func @transform_2(%arg0: i32) -> (i32, i32) {
    %c0_i32 = arith.constant 0 : i32
    %c0_i32_0 = arith.constant 0 : i32
    %c0_i32_1 = arith.constant 0 : i32
    return %c0_i32, %c0_i32_0 : i32, i32
  }
  func.func @transform_3(%arg0: i32) -> (i32, i32) {
    %c0_i32 = arith.constant 0 : i32
    %c0_i32_0 = arith.constant 0 : i32
    return %arg0, %c0_i32 : i32, i32
  }
}

</mosaic_0001>

<bundles_post_ra>
// kernel: tpu_custom_call.1
= control target key start
LH: loop header
LB: loop body
LE: loop exit
PB: predicated region body
PF: predicated region fallthrough
CT: control target
= control target key end

     0   :  { %vm32_vm0 = vcmask 523264   ;;  %s278_s0 = inlined_call_operand.vmem [shape: f32[16,64], index: 0, kind: input, shape index: {}]   ;;  %s279_s1 = inlined_call_operand.vmem [shape: f32[64,32], index: 1, kind: input, shape index: {}]   ;;  %s280_s2 = inlined_call_operand.vmem [shape: f32[1,32], index: 2, kind: input, shape index: {}]   ;;  %s281_s3 = inlined_call_operand.hbm [shape: f32[16,32], index: 3, kind: output, shape index: {}]  }
   0x1   :  { %v17_v0 = vld [vmem:[%s279_s1] sm:$0xff]  ;;  %v18_v1 = vld [vmem:[%s279_s1 + $0x8] sm:$0xff]  ;;  %v19_v2 = vld [vmem:[%s279_s1 + $0x10] sm:$0xff] }
   0x2   :  { %v165_v3 = vpack.c.bf16 %v18_v1, %v17_v0  ;;  %v20_v4 = vld [vmem:[%s279_s1 + $0x18] sm:$0xff]  ;;  %v21_v6 = vld [vmem:[%s279_s1 + $0x20] sm:$0xff]  ;;  %v22_v7 = vld [vmem:[%s279_s1 + $0x28] sm:$0xff] }
   0x3   :  { %v169_v5 = vpack.c.bf16 %v20_v4, %v19_v2  ;;  %v15_v8 = vld [vmem:[%s278_s0] sm:$0xff] }
   0x4   :  { %166 = vmatprep.subr.bf16.mxu0 %v165_v3  ;;  %162 = vmatprep.mubr.msk.f32.mxu0 %vm32_vm0, %v15_v8 }
   0x5   :  { %8 = vsyncpa [#allocation3], 0  ;;  %168 = vmatpush3.bf16.msra.mxu0 %v165_v3  ;;  %v173_v9 = vpack.c.bf16 %v22_v7, %v21_v6  ;;  %v23_v10 = vld [vmem:[%s279_s1 + $0x30] sm:$0xff]  ;;  %v24_v11 = vld [vmem:[%s279_s1 + $0x38] sm:$0xff]  ;;  %s208_s7 = smov [#allocation2]   ;;  %vm114_vm1 = vcmask 261120  }
   0x6   :  { %170 = vmatprep.subr.bf16.mxu0 %v169_v5  ;;  %v177_v12 = vpack.c.bf16 %v24_v11, %v23_v10  ;;  %v16_v13 = vld [vmem:[%s278_s0 + $0x8] sm:$0xff]  ;;  %v133_v14 = vld [vmem:[%s280_s2] ss:$0 sm:$0xff]  ;;  %s122_s8 = sshll.u32 %s208_s7, 4  ;;  %s123_s8 = int_to_ptr.vmem [resolvable:$true] %s122_s8 }
   0x7   :  { %s184_s1 = scalar_lea.vmem %s123_s8, 256  ;;  %p189_p1 = scmp.lt.s32.totalorder %s123_s8, %s123_s8 }
   0x8   :  { %p185_p0 = scmp.ne.s32.totalorder %s123_s8, %s184_s1  ;;  %p190_p2 = scmp.lt.s32.totalorder %s184_s1, %s184_s1 }
   0x9   :  { %172 = vmatpush3.bf16.msra.mxu0 %v169_v5 }
   0xa   :  { %174 = vmatprep.subr.bf16.mxu0 %v173_v9  ;;  %p191_p3 = por %p190_p2, %p189_p1 }
   0xc   :  { %p192_p4 = pnand %p191_p3, %p185_p0 }
   0xd   :  { %176 = vmatpush3.bf16.msra.mxu0 %v173_v9 }
   0xe   :  { %178 = vmatprep.subr.bf16.mxu0 %v177_v12 }
  0x11   :  { %180 = vmatpush3.bf16.msra.mxu0 %v177_v12 }
  0x14   :  { %163 = vmatmul.mubr.msk.f32.vlgmr.msra.gmra.mrb[0].mxu0 %vm32_vm0, %v16_v13 }
  0xe7   :  { %v164_v15 = vpop.f32.mrb[0].mxu0 }
  0xe8   :  { %v111_v16 = vadd.f32 %v164_v15, %v133_v14  ;;  %v105_v17 = vpop.f32.mrb[1].mxu0 }
  0xe9   :  { %v106_v18 = vadd.f32 %v133_v14, %v105_v17 }
  0xea   :  { %116 = vst.msk [vmem:[#allocation2 + $0x8] sm:$0xff] %vm114_vm1, %v111_v16 }
  0xeb   :  { %115 = vst.msk [vmem:[#allocation2] sm:$0xff] %vm114_vm1, %v106_v18 }
  0xec   :  { %195 = shalt.err (!%p192_p4)
}
  0xed   :  { %s196_s2 = scalar_lea.hbm %s281_s3, 256 }
  0xee   :  { %p197_p5 = scmp.ne.s32.totalorder %s281_s3, %s196_s2  ;;  %p200_p6 = scmp.lt.u32.totalorder %s196_s2, %s281_s3 }
  0xf0   :  { %p202_p7 = pnand %p200_p6, %p197_p5 }
  0xf2   :  { %205 = shalt.err (!%p202_p7)
}
  0xf3   :  { %s209_s14 = smov 128   ;;  %s210_s15 = smov 8  }
  0xf4   :  { %128 = dma.vmem_to_hbm [thread:$0]  %s123_s8, 256, %s281_s3, [#allocation3], %s209_s14, %s209_s14, %s210_s15  }
  0xf5   :  { %206 = dma.done.wait [#allocation3], 256  }
  0xf6   :  { %207 = vsyncadd [#allocation3], 4294967040 }
  0xf7   :  { %132 = vsyncpa [#allocation3], 1 }

</bundles_post_ra>
